<compile_context>
chip_gen: v7x
topology: tpu7x:2x2x1
jax: 0.10.0
libtpu: 0.0.40
codegen_flags: <defaults>
</compile_context>

<pallas_src>
import functools

import jax
import jax.numpy as jnp
from jax.experimental import pallas as pl
from jax.experimental.pallas import tpu as pltpu

MARGIN = 1.0   # stands in for cfg.METRIC_MARGIN_TRIPLET
EPS = 1e-8     # stands in for cfg.EPS


def _round_up(x, m):
    return ((x + m - 1) // m) * m


def _cdiv(a, b):
    return (a + b - 1) // b


def _vmem_capacity_bytes(default=64 * 1024 * 1024):
    """Physical VMEM per TensorCore; falls back to the smallest (v7x) value."""
    try:
        cap = getattr(pltpu.get_tpu_info(), "vmem_capacity_bytes", None)
        if cap:
            return int(cap)
    except Exception:
        pass
    return default


def _triplet_loss_kernel(x_ref, o_ref, *, margin, eps, num_valid, block_rows,
                         tiles_per_split, feat):
    """Processes one (block_rows, 3*feat) tile; each row is one triplet.

    x_ref: (block_rows, 3*feat) tile of the (T, 3*feat) triplet view.
    o_ref: (1, 8, 128) f32 VMEM accumulator block for this split (revisited
           across the inner "arbitrary" grid axis).
    """
    c = pl.program_id(0)          # core-split index ("parallel" axis)
    i = pl.program_id(1)          # row-tile index within the split ("arbitrary")

    @pl.when(i == 0)
    def _init():
        o_ref[...] = jnp.zeros_like(o_ref)

    x = x_ref[...]
    if x.dtype != jnp.float32:    # bf16 path: single upcast on the full tile
        x = x.astype(jnp.float32)

    a = x[:, 0 * feat:1 * feat]
    p = x[:, 1 * feat:2 * feat]
    n = x[:, 2 * feat:3 * feat]

    # eps added to the difference before squaring, matching the reference.
    dp = a - p + eps
    dn = a - n + eps
    dist_p = jnp.sqrt(jnp.sum(dp * dp, axis=1, keepdims=True))
    dist_n = jnp.sqrt(jnp.sum(dn * dn, axis=1, keepdims=True))
    per_row = jnp.maximum(dist_p - dist_n + margin, 0.0)      # (block_rows, 1)

    # Validity mask against the *unclamped* global row index.  This kills
    #  (a) the out-of-bounds tail of the last tile (DMA leaves garbage there,
    #      possibly inf/NaN -> must select with where, never multiply), and
    #  (b) the duplicated tile of an overflow iteration (index_map clamps the
    #      block index, the mask zeroes the whole contribution).
    tile = c * tiles_per_split + i
    row0 = tile * block_rows
    rows = row0 + jax.lax.broadcasted_iota(jnp.int32, (block_rows, 1), 0)
    per_row = jnp.where(rows < num_valid, per_row, 0.0)

    o_ref[...] += jnp.sum(per_row)
    # TODO(synk): if xprof shows exposed DMA at very small D, try
    # pipeline_mode=pl.Buffered(3) on the x BlockSpec; if v7x profiling shows
    # the VALU/XLU slots saturating, offload the D-axis reduce to the MXU.


def triplet_loss(inputs, t_labels=None, *, margin=MARGIN, eps=EPS,
                 block_rows=None):
    """Pallas implementation of TripletLoss.forward.

    inputs: (B, D) array with interleaved (anchor, positive, negative) triplet
            rows.  t_labels is unused, matching the reference forward.
    Returns a scalar float32 loss (sum of triplet losses divided by B).
    """
    del t_labels  # unused in the reference forward
    B, D = inputs.shape
    T = B // 3
    if T == 0:
        return jnp.float32(0.0)

    # Contiguous (B, D) -> (T, 3D) view: pure bitcast, no extra HBM traffic.
    x = inputs if B == T * 3 else inputs[: T * 3]
    x = x.reshape(T, 3 * D)

    itemsize = jnp.dtype(x.dtype).itemsize
    row_align = max(8, 32 // itemsize)        # 8 for f32, 16 for bf16/f16

    # Generation-aware tile sizing / scoped-VMEM budget.
    vmem_cap = _vmem_capacity_bytes()
    if vmem_cap >= 100 * 1024 * 1024:         # v5e / v6e: 128 MiB physical VMEM
        tile_bytes, vmem_limit = 8 * 1024 * 1024, 80 * 1024 * 1024
    else:                                     # v7x: 64 MiB physical VMEM
        tile_bytes, vmem_limit = 4 * 1024 * 1024, 48 * 1024 * 1024

    if block_rows is None:
        br = max(1, tile_bytes // (itemsize * 3 * D))
        block_rows = max(row_align, (br // row_align) * row_align)
    block_rows = max(row_align, _round_up(block_rows, row_align))
    block_rows = min(block_rows, _round_up(T, row_align))

    num_tiles = _cdiv(T, block_rows)
    num_splits = 2 if num_tiles >= 2 else 1   # 2-way parallel axis (v7x megacore)
    tiles_per_split = _cdiv(num_tiles, num_splits)

    kernel = functools.partial(
        _triplet_loss_kernel, margin=float(margin), eps=float(eps),
        num_valid=T, block_rows=block_rows, tiles_per_split=tiles_per_split,
        feat=D)

    def x_map(c, i):
        # Clamp so an overflow iteration (when num_tiles is odd) re-reads the
        # last valid tile instead of issuing a fully out-of-bounds DMA; the
        # in-kernel row mask zeroes its contribution.
        t = jnp.minimum(c * tiles_per_split + i, num_tiles - 1)
        return (t, 0)

    out = pl.pallas_call(
        kernel,
        out_shape=jax.ShapeDtypeStruct((num_splits, 8, 128), jnp.float32),
        grid=(num_splits, tiles_per_split),
        in_specs=[pl.BlockSpec((block_rows, 3 * D), x_map)],
        out_specs=pl.BlockSpec((1, 8, 128), lambda c, i: (c, 0, 0)),
        compiler_params=pltpu.CompilerParams(
            dimension_semantics=("parallel", "arbitrary"),
            vmem_limit_bytes=vmem_limit),
    )(x)

    # Per-split partial sums -> total / batch_size (tiny wrapper-side reduce).
    return jnp.sum(out[:, 0, 0]) / jnp.float32(B)


def _reference(inputs, margin=MARGIN, eps=EPS):
    """Pure-JAX reference mirroring the PyTorch forward (sanity check)."""
    B, D = inputs.shape
    T = B // 3
    trip = inputs[: T * 3].reshape(T, 3, D)
    a, p, n = trip[:, 0, :], trip[:, 1, :], trip[:, 2, :]
    dp = jnp.sqrt(jnp.sum((a - p + eps) ** 2, axis=1))
    dn = jnp.sqrt(jnp.sum((a - n + eps) ** 2, axis=1))
    return jnp.sum(jnp.maximum(dp - dn + margin, 0.0)) / B


if __name__ == "__main__":
    key = jax.random.PRNGKey(0)
    k1, k2, k3, k4, k5 = jax.random.split(key, 5)

    # 1) Tiny single-tile case: 2 triplets of 32-dim embeddings.  Exercises the
    #    overhanging last (only) block: 2 valid rows inside an 8-row tile.
    B, D = 6, 32
    inputs = jax.random.normal(k1, (B, D), dtype=jnp.float32)
    t_labels = jax.random.randint(k2, (B,), 0, 4)  # unused, signature parity
    loss = triplet_loss(inputs, t_labels)
    jax.block_until_ready(loss)
    ref = _reference(inputs)
    assert jnp.allclose(loss, ref, atol=1e-4, rtol=1e-5), (loss, ref)

    # 2) Multi-tile + 2-way split: 41 triplets, forced 8-row tiles -> 6 tiles,
    #    grid (2, 3); last tile has a masked in-tile tail (rows 41..47).
    B2, D2 = 123, 128
    inputs2 = jax.random.normal(k3, (B2, D2), dtype=jnp.float32)
    loss2 = triplet_loss(inputs2, block_rows=8)
    jax.block_until_ready(loss2)
    ref2 = _reference(inputs2)
    assert jnp.allclose(loss2, ref2, atol=1e-4, rtol=1e-5), (loss2, ref2)

    # 3) Odd tile count: 40 triplets, 8-row tiles -> 5 tiles, grid (2, 3) with
    #    one overflow iteration (exercises the clamped index_map + full mask).
    B3, D3 = 120, 128
    inputs3 = jax.random.normal(k4, (B3, D3), dtype=jnp.float32)
    loss3 = triplet_loss(inputs3, block_rows=8)
    jax.block_until_ready(loss3)
    ref3 = _reference(inputs3)
    assert jnp.allclose(loss3, ref3, atol=1e-4, rtol=1e-5), (loss3, ref3)

    # 4) bf16 inputs: half HBM bytes, 16-row alignment, single in-kernel upcast.
    B4, D4 = 96, 128
    inputs4 = jax.random.normal(k5, (B4, D4), dtype=jnp.bfloat16)
    loss4 = triplet_loss(inputs4)
    jax.block_until_ready(loss4)
    ref4 = _reference(inputs4.astype(jnp.float32))
    assert jnp.allclose(loss4, ref4, atol=1e-4, rtol=1e-4), (loss4, ref4)

    print("KERNEL_OK")
</pallas_src>

<mosaic_0001>
module attributes {stable_mosaic.version = 11 : i64} {
  func.func @_triplet_loss_kernel(%arg0: i32, %arg1: i32, %arg2: memref<8x96xf32, #tpu.memory_space<vmem>>, %arg3: memref<1x8x128xf32, #tpu.memory_space<vmem>>) attributes {dimension_semantics = [#tpu.dimension_semantics<parallel>, #tpu.dimension_semantics<arbitrary>], iteration_bounds = array<i64: 1, 1>, scalar_prefetch = 0 : i64, scratch_operands = 0 : i64, tpu.core_type = #tpu.core_type<tc>, window_params = [{transform_indices = @transform_0, window_bounds = array<i64: 8, 96>}, {transform_indices = @transform_1, window_bounds = array<i64: 1, 8, 128>}]} {
    %c0_i32 = arith.constant 0 : i32
    %0 = arith.cmpi eq, %arg1, %c0_i32 : i32
    %1 = arith.extui %0 : i1 to i32
    %c0_i32_0 = arith.constant 0 : i32
    %2 = arith.cmpi ne, %1, %c0_i32_0 : i32
    scf.if %2 {
      %cst_15 = arith.constant 0.000000e+00 : f32
      %44 = vector.broadcast %cst_15 : f32 to vector<1x8x128xf32>
      %c0_16 = arith.constant 0 : index
      %c0_17 = arith.constant 0 : index
      %c0_18 = arith.constant 0 : index
      %45 = vector.load %arg3[%c0_16, %c0_17, %c0_18] : memref<1x8x128xf32, #tpu.memory_space<vmem>>, vector<1x8x128xf32>
      tpu.vector_store %arg3[%c0_16, %c0_17, %c0_18], %44 {strides = array<i32>} : memref<1x8x128xf32, #tpu.memory_space<vmem>>, vector<1x8x128xf32>,
    } else {
    }
    %c0 = arith.constant 0 : index
    %c0_1 = arith.constant 0 : index
    %3 = vector.load %arg2[%c0, %c0_1] : memref<8x96xf32, #tpu.memory_space<vmem>>, vector<8x96xf32>
    %4 = vector.extract_strided_slice %3 {offsets = [0, 0], sizes = [8, 32], strides = [1, 1]} : vector<8x96xf32> to vector<8x32xf32>
    %5 = vector.extract_strided_slice %3 {offsets = [0, 32], sizes = [8, 32], strides = [1, 1]} : vector<8x96xf32> to vector<8x32xf32>
    %6 = vector.extract_strided_slice %3 {offsets = [0, 64], sizes = [8, 32], strides = [1, 1]} : vector<8x96xf32> to vector<8x32xf32>
    %7 = arith.subf %4, %5 : vector<8x32xf32>
    %cst = arith.constant 9.99999993E-9 : f32
    %8 = vector.broadcast %cst : f32 to vector<8x32xf32>
    %9 = arith.addf %7, %8 : vector<8x32xf32>
    %10 = arith.subf %4, %6 : vector<8x32xf32>
    %cst_2 = arith.constant 9.99999993E-9 : f32
    %11 = vector.broadcast %cst_2 : f32 to vector<8x32xf32>
    %12 = arith.addf %10, %11 : vector<8x32xf32>
    %13 = arith.mulf %9, %9 : vector<8x32xf32>
    %cst_3 = arith.constant dense<0.000000e+00> : vector<8xf32>
    %14 = vector.multi_reduction <add>, %13, %cst_3 [1] : vector<8x32xf32> to vector<8xf32>
    %15 = vector.shape_cast %14 : vector<8xf32> to vector<8x1xf32>
    %16 = math.sqrt %15 : vector<8x1xf32>
    %17 = arith.mulf %12, %12 : vector<8x32xf32>
    %cst_4 = arith.constant dense<0.000000e+00> : vector<8xf32>
    %18 = vector.multi_reduction <add>, %17, %cst_4 [1] : vector<8x32xf32> to vector<8xf32>
    %19 = vector.shape_cast %18 : vector<8xf32> to vector<8x1xf32>
    %20 = math.sqrt %19 : vector<8x1xf32>
    %21 = arith.subf %16, %20 : vector<8x1xf32>
    %cst_5 = arith.constant 1.000000e+00 : f32
    %22 = vector.broadcast %cst_5 : f32 to vector<8x1xf32>
    %23 = arith.addf %21, %22 : vector<8x1xf32>
    %cst_6 = arith.constant 0.000000e+00 : f32
    %24 = vector.broadcast %cst_6 : f32 to vector<8x1xf32>
    %25 = arith.maximumf %23, %24 : vector<8x1xf32>
    %c1_i32 = arith.constant 1 : i32
    %26 = arith.muli %arg0, %c1_i32 : i32
    %27 = arith.addi %26, %arg1 : i32
    %c8_i32 = arith.constant 8 : i32
    %28 = arith.muli %27, %c8_i32 : i32
    %29 = tpu.iota {dimensions = array<i32: 0>} : vector<8x1xi32>
    %30 = vector.broadcast %28 : i32 to vector<8x1xi32>
    %31 = arith.addi %30, %29 : vector<8x1xi32>
    %c2_i32 = arith.constant 2 : i32
    %32 = vector.broadcast %c2_i32 : i32 to vector<8x1xi32>
    %33 = arith.cmpi slt, %31, %32 : vector<8x1xi32>
    %cst_7 = arith.constant 0.000000e+00 : f32
    %34 = vector.broadcast %cst_7 : f32 to vector<8x1xf32>
    %35 = arith.select %33, %25, %34 : vector<8x1xi1>, vector<8x1xf32>
    %c0_8 = arith.constant 0 : index
    %c0_9 = arith.constant 0 : index
    %c0_10 = arith.constant 0 : index
    %36 = vector.load %arg3[%c0_8, %c0_9, %c0_10] : memref<1x8x128xf32, #tpu.memory_space<vmem>>, vector<1x8x128xf32>
    %37 = vector.shape_cast %35 : vector<8x1xf32> to vector<1x8x1xf32>
    %cst_11 = arith.constant dense<0.000000e+00> : vector<1xf32>
    %38 = vector.multi_reduction <add>, %37, %cst_11 [1, 2] : vector<1x8x1xf32> to vector<1xf32>
    %39 = vector.shape_cast %38 : vector<1xf32> to vector<1x1x1xf32>
    %40 = vector.extract %39[0, 0, 0] : f32 from vector<1x1x1xf32>
    %41 = vector.broadcast %40 : f32 to vector<1x8x128xf32>
    %42 = arith.addf %36, %41 : vector<1x8x128xf32>
    %c0_12 = arith.constant 0 : index
    %c0_13 = arith.constant 0 : index
    %c0_14 = arith.constant 0 : index
    %43 = vector.load %arg3[%c0_12, %c0_13, %c0_14] : memref<1x8x128xf32, #tpu.memory_space<vmem>>, vector<1x8x128xf32>
    tpu.vector_store %arg3[%c0_12, %c0_13, %c0_14], %42 {strides = array<i32>} : memref<1x8x128xf32, #tpu.memory_space<vmem>>, vector<1x8x128xf32>,
    return
  }
  func.func @transform_0(%arg0: i32, %arg1: i32) -> (i32, i32) {
    %c1_i32 = arith.constant 1 : i32
    %0 = arith.muli %arg0, %c1_i32 : i32
    %1 = arith.addi %0, %arg1 : i32
    %c0_i32 = arith.constant 0 : i32
    %2 = arith.minsi %1, %c0_i32 : i32
    %c0_i32_0 = arith.constant 0 : i32
    %c0_i32_1 = arith.constant 0 : i32
    return %2, %c0_i32_0 : i32, i32
  }
  func.func @transform_1(%arg0: i32, %arg1: i32) -> (i32, i32, i32) {
    %c0_i32 = arith.constant 0 : i32
    %c0_i32_0 = arith.constant 0 : i32
    %c0_i32_1 = arith.constant 0 : i32
    return %arg0, %c0_i32, %c0_i32_0 : i32, i32, i32
  }
}

</mosaic_0001>

<bundles_post_ra>
// kernel: tpu_custom_call.1
= control target key start
LH: loop header
LB: loop body
LE: loop exit
PB: predicated region body
PF: predicated region fallthrough
CT: control target
= control target key end

     0   :  { %6 = vsyncpa [#allocation3], 0  ;;  %s223_s0 = inlined_call_operand.hbm [shape: f32[2,96], index: 0, kind: input, shape index: {}]   ;;  %s224_s1 = inlined_call_operand.hbm [shape: f32[1,8,128], index: 1, kind: output, shape index: {}]  }
   0x1   :  { %7 = vsyncpa [#allocation4], 0 }
   0x2   :  { %18 = vsyncadd [#allocation3], 96  ;;  %s183_s6 = smov [#allocation2]   ;;  %s135_s10 = scalar_lea.hbm %s223_s0, 32 }
   0x3   :  { %s23_s7 = sshll.u32 %s183_s6, 4  ;;  %p136_p0 = scmp.ne.s32.totalorder %s223_s0, %s135_s10  ;;  %s24_s7 = int_to_ptr.vmem [resolvable:$true] %s23_s7 }
   0x4   :  { %p139_p1 = scmp.lt.u32.totalorder %s135_s10, %s223_s0 }
   0x6   :  { %p141_p2 = pnand %p139_p1, %p136_p0 }
   0x8   :  { %144 = shalt.err (!%p141_p2)
}
   0x9   :  { %s145_s15 = scalar_lea.vmem %s24_s7, 32  ;;  %s149_s16 = scalar_lea.vmem %s24_s7, 128 }
   0xa   :  { %p146_p3 = scmp.ne.s32.totalorder %s24_s7, %s145_s15  ;;  %p150_p4 = scmp.lt.s32.totalorder %s24_s7, %s24_s7 }
   0xb   :  { %p151_p5 = scmp.lt.s32.totalorder %s149_s16, %s145_s15 }
   0xd   :  { %p152_p6 = por %p151_p5, %p150_p4 }
   0xf   :  { %p153_p7 = pnand %p152_p6, %p146_p3 }
  0x11   :  { %156 = shalt.err (!%p153_p7)
}
  0x12   :  { %s184_s17 = smov 32   ;;  %s185_s18 = smov 2  }
  0x13   :  { %29 = dma.hbm_to_vmem [thread:$0]  %s223_s0, 32, %s24_s7, [#allocation3], %s184_s17, %s184_s17, %s185_s18  }
  0x14   :  { %179 = dma.done.wait [#allocation3], 128  }
  0x15   :  { %180 = vsyncadd [#allocation3], 4294967168  ;;  %v44_v0 = vld [vmem:[#allocation2] sm:$0xff]  ;;  %s186_s21 = smov 96   ;;  %s187_s22 = smov 64   ;;  %vm57_vm0 = vcmask 261120   ;;  %v84_v16 = vlaneseq }
  0x16   :  { %46 = vrot.lane.b32.xlu0 %v44_v0, %s186_s21  ;;  %vm91_vm6 = vcmask 7168   ;;  %s188_s0 = smov [#allocation5]  }
  0x17   :  { %v85_v24 = vshrl.u32 %v84_v16, 7  ;;  %s111_s23 = sshll.u32 %s188_s0, 4  ;;  %s112_s23 = int_to_ptr.vmem [resolvable:$true] %s111_s23 }
  0x18   :  { %s157_s25 = scalar_lea.vmem %s112_s23, 128  ;;  %p162_p9 = scmp.lt.s32.totalorder %s112_s23, %s112_s23 }
  0x19   :  { %vm88_vm5 = vcmp.lt.s32.totalorder %v85_v24, 2  ;;  %p158_p8 = scmp.ne.s32.totalorder %s112_s23, %s157_s25  ;;  %p163_p10 = scmp.lt.s32.totalorder %s157_s25, %s157_s25 }
  0x1a   :  { %51 = vrot.lane.b32.xlu0 %v44_v0, %s187_s22 }
  0x1b   :  { %p164_p11 = por %p163_p10, %p162_p9 }
  0x1d   :  { %p165_p12 = pnand %p164_p11, %p158_p8 }
  0x88   :  { %v47_v1 = vpop.permute.xlu0 %46 }
  0x89   :  { %v49_v2 = vsub.f32 %v44_v0, %v47_v1 }
  0x8b   :  { %v50_v3 = vadd.f32 1e-08, %v49_v2 }
  0x8c   :  { %v52_v4 = vpop.permute.xlu0 %51 }
  0x8d   :  { %v56_v5 = vmul.f32 %v50_v3, %v50_v3  ;;  %v54_v6 = vsub.f32 %v44_v0, %v52_v4 }
  0x8f   :  { %v55_v7 = vadd.f32 1e-08, %v54_v6  ;;  %v58_v8 = vsel %vm57_vm0, %v56_v5, 0.0 }
  0x90   :  { %59 = vadd.xlane.f32.xlu1 %v58_v8 }
  0x91   :  { %v68_v9 = vmul.f32 %v55_v7, %v55_v7 }
  0x93   :  { %v69_v10 = vsel %vm57_vm0, %v68_v9, 0.0 }
  0x94   :  { %70 = vadd.xlane.f32.xlu1 %v69_v10 }
 0x11d   :  { %v60_v11 = vpop.xlane.xlu1 %59 }
 0x11e   :  { %131 = vrsqrt.f32 %v60_v11  ;;  %vm63_vm1 = vcmp.eq.f32.partialorder %v60_v11, inf  ;;  %v66_v20 = vand.u32 2147483648, %v60_v11  ;;  %vm65_vm3 = vcmp.eq.f32.partialorder %v60_v11, 0.0 }
 0x121   :  { %v71_v12 = vpop.xlane.xlu1 %70 }
 0x122   :  { %133 = vrsqrt.f32 %v71_v12  ;;  %vm74_vm2 = vcmp.eq.f32.partialorder %v71_v12, inf  ;;  %v77_v19 = vand.u32 2147483648, %v71_v12  ;;  %vm76_vm4 = vcmp.eq.f32.partialorder %v71_v12, 0.0 }
 0x128   :  { %v132_v13 = vpop.eup %131 }
 0x129   :  { %v62_v14 = vmul.f32 %v132_v13, %v60_v11 }
 0x12b   :  { %v64_v18 = vsel %vm63_vm1, %v60_v11, %v62_v14 }
 0x12c   :  { %v134_v15 = vpop.eup %133  ;;  %v67_v22 = vsel %vm65_vm3, %v66_v20, %v64_v18 }
 0x12d   :  { %v73_v17 = vmul.f32 %v134_v15, %v71_v12 }
 0x12f   :  { %v75_v21 = vsel %vm74_vm2, %v71_v12, %v73_v17 }
 0x130   :  { %v78_v23 = vsel %vm76_vm4, %v77_v19, %v75_v21 }
 0x131   :  { %v79_v25 = vsub.f32 %v67_v22, %v78_v23 }
 0x133   :  { %v80_v26 = vadd.f32 1.0, %v79_v25 }
 0x135   :  { %v81_v27 = vmax.f32 %v80_v26, 0.0 }
 0x137   :  { %v89_v28 = vsel %vm88_vm5, %v81_v27, 0.0 }
 0x138   :  { %v92_v29 = vsel %vm91_vm6, %v89_v28, 0.0 }
 0x139   :  { %93 = vadd.xlane.f32.xlu0 %v92_v29 }
 0x1c6   :  { %v94_v30 = vpop.xlane.xlu0 %93 }
 0x1c7   :  { %v95_v31 = vrot.slane %v94_v30, 4 }
 0x1c9   :  { %v96_v32 = vadd.f32 %v95_v31, %v94_v30 }
 0x1cb   :  { %v97_v33 = vrot.slane %v96_v32, 2 }
 0x1cd   :  { %v98_v34 = vadd.f32 %v97_v33, %v96_v32 }
 0x1cf   :  { %v99_v35 = vrot.slane %v98_v34, 1 }
 0x1d1   :  { %v100_v36 = vadd.f32 %v99_v35, %v98_v34 }
 0x1d3   :  { %122 = vpush %v100_v36 }
 0x204   :  { %s123_s24 = spop %122 }
 0x205   :  { %v102_v37 = vstv %s123_s24 }
 0x206   :  { %104 = vst [vmem:[#allocation5] sm:$0xff] %v102_v37 }
 0x207   :  { %168 = shalt.err (!%p165_p12)
}
 0x208   :  { %s169_s28 = scalar_lea.hbm %s224_s1, 128 }
 0x209   :  { %p170_p13 = scmp.ne.s32.totalorder %s224_s1, %s169_s28  ;;  %p173_p0 = scmp.lt.u32.totalorder %s169_s28, %s224_s1 }
 0x20b   :  { %p175_p1 = pnand %p173_p0, %p170_p13 }
 0x20d   :  { %178 = shalt.err (!%p175_p1)
}
 0x20e   :  { %114 = dma.vmem_to_hbm [thread:$0]  %s112_s23, 128, %s224_s1, [#allocation4]  }
 0x20f   :  { %181 = dma.done.wait [#allocation4], 128  }
 0x210   :  { %182 = vsyncadd [#allocation4], 4294967168 }
 0x211   :  { %118 = vsyncpa [#allocation3], 1 }
 0x212   :  { %119 = vsyncpa [#allocation4], 1 }

</bundles_post_ra>
